<compile_context>
chip_gen: v7x
topology: tpu7x:2x2x1
jax: 0.10.0
libtpu: 0.0.40
codegen_flags: <defaults>
</compile_context>

<pallas_src>
import functools

import jax
import jax.numpy as jnp
from jax.experimental import pallas as pl
from jax.experimental.pallas import tpu as pltpu


# ----------------------------------------------------------------------------
# Fused Pallas kernel: all layers, all batch elements, single invocation.
# ----------------------------------------------------------------------------
def _rel_nbf_fused_kernel(a_cat_ref, bnd_ref, rel_rows_ref, w1_ref, w2_ref,
                          bias_ref, gamma_ref, beta_ref, mmean_ref, o_ref,
                          *, num_layers, num_rel):
    a_cat = a_cat_ref[...]          # (N, R*N)   A_cat[dst, r*N+src] = #edges
    mmean = mmean_ref[...]          # (B*D, B*D) per-batch-chunk averaging matrix
    bnd = bnd_ref[...]              # (N, B*D)   boundary == layer-0 input
    x = bnd

    for l in range(num_layers):     # small static L -> fully unrolled
        # distmult message + sum aggregation for every relation and every batch
        # element in ONE MXU matmul:  u = boundary + A_cat @ (rel ⊙ x_rep)
        x_rep = jnp.concatenate([x] * num_rel, axis=0)            # (R*N, B*D)
        msgs = rel_rows_ref[l] * x_rep                            # (R*N, B*D)
        u = bnd + jnp.dot(a_cat, msgs, preferred_element_type=jnp.float32)

        # combine: Linear(cat([x, u], -1)) == x @ W1 + u @ W2 + b
        # (W1/W2 are batch-block-diagonal (B*D, B*D) so batch stays folded)
        y = (jnp.dot(x, w1_ref[l], preferred_element_type=jnp.float32)
             + jnp.dot(u, w2_ref[l], preferred_element_type=jnp.float32)
             + bias_ref[l])

        # LayerNorm(eps=1e-5, biased variance) over each D-chunk, stats via MXU
        mu = jnp.dot(y, mmean, preferred_element_type=jnp.float32)
        yc = y - mu
        var = jnp.dot(yc * yc, mmean, preferred_element_type=jnp.float32)
        y = yc * jax.lax.rsqrt(var + 1e-5) * gamma_ref[l] + beta_ref[l]

        # ReLU + short_cut residual (input_dim == hidden)
        x = jnp.maximum(y, 0.0) + x

    o_ref[...] = x


# ----------------------------------------------------------------------------
# Wrapper: parameter stacking + layout plumbing + pallas_call
# ----------------------------------------------------------------------------
def rel_nbfnet_forward(params, adj, r_idx, num_node, dim):
    layers = params["layers"]
    L = len(layers)
    B = int(r_idx.shape[0])
    R = int(adj.shape[0])
    N = int(num_node)
    D = int(dim)
    BD = B * D

    rel = jnp.stack([lp["rel"] for lp in layers])       # (L, R, D)
    w1 = jnp.stack([lp["w1"] for lp in layers])         # (L, D, D)
    w2 = jnp.stack([lp["w2"] for lp in layers])         # (L, D, D)
    bias = jnp.stack([lp["bias"] for lp in layers])     # (L, D)
    gamma = jnp.stack([lp["gamma"] for lp in layers])   # (L, D)
    beta = jnp.stack([lp["beta"] for lp in layers])     # (L, D)

    # ---- host-side layout plumbing (tiny, runs once in XLA) ----
    # A_cat[dst, r*N + src] = adj[r, dst, src]
    a_cat = jnp.transpose(adj, (1, 0, 2)).reshape(N, R * N)
    # relation embeddings: tiled over batch lanes, repeated per source-node row
    rel_rows = jnp.repeat(jnp.tile(rel, (1, 1, B)), N, axis=1)        # (L, R*N, B*D)
    # batch-block-diagonal combine weights: (L, B*D, B*D)
    eye_b = jnp.eye(B, dtype=jnp.float32)
    w1_bd = jnp.einsum("bc,ldo->lbdco", eye_b, w1).reshape(L, BD, BD)
    w2_bd = jnp.einsum("bc,ldo->lbdco", eye_b, w2).reshape(L, BD, BD)
    bias_t = jnp.tile(bias, (1, B))[:, None, :]                       # (L, 1, B*D)
    gamma_t = jnp.tile(gamma, (1, B))[:, None, :]
    beta_t = jnp.tile(beta, (1, B))[:, None, :]
    # per-batch-chunk averaging matrix for LayerNorm stats (keeps (N, B*D) layout)
    mean_mat = jnp.kron(eye_b, jnp.ones((D, D), jnp.float32) / D)     # (B*D, B*D)
    # boundary, folded to (N, B*D); scatter_add matches torch scatter_add_
    boundary = jnp.zeros((N, B, D), jnp.float32).at[r_idx, jnp.arange(B), :].add(1.0)
    boundary = boundary.reshape(N, BD)

    kernel = functools.partial(_rel_nbf_fused_kernel, num_layers=L, num_rel=R)

    out2d = pl.pallas_call(
        kernel,
        out_shape=jax.ShapeDtypeStruct((N, BD), jnp.float32),
        in_specs=[pl.BlockSpec(memory_space=pltpu.MemorySpace.VMEM)
                  for _ in range(9)],
        out_specs=pl.BlockSpec(memory_space=pltpu.MemorySpace.VMEM),
    )(a_cat, boundary, rel_rows, w1_bd, w2_bd, bias_t, gamma_t, beta_t, mean_mat)

    # (N, B*D) -> (B, N, D)  ==  hiddens[-1].transpose(1, 0)
    return jnp.transpose(out2d.reshape(N, B, D), (1, 0, 2))


# ----------------------------------------------------------------------------
# Parameters, boundary and pure-JAX reference
# ----------------------------------------------------------------------------
def init_params(key, num_rel, dim, num_layers):
    layers = []
    for _ in range(num_layers):
        key, k1, k2, k3, k4 = jax.random.split(key, 5)
        scale = 1.0 / jnp.sqrt(2.0 * dim)
        layers.append({
            "rel": jax.random.normal(k1, (num_rel, dim), jnp.float32),
            "w1": jax.random.normal(k2, (dim, dim), jnp.float32) * scale,
            "w2": jax.random.normal(k3, (dim, dim), jnp.float32) * scale,
            "bias": jax.random.normal(k4, (dim,), jnp.float32) * 0.01,
            "gamma": jnp.ones((dim,), jnp.float32),
            "beta": jnp.zeros((dim,), jnp.float32),
        })
    return {"layers": layers}


def reference_forward(params, adj, r_idx, num_node, dim):
    hp = jax.lax.Precision.HIGHEST
    B = r_idx.shape[0]
    boundary = jnp.zeros((B, num_node, dim), jnp.float32)
    boundary = boundary.at[jnp.arange(B), r_idx].add(1.0)
    x = boundary
    for lp in params["layers"]:
        u = boundary + jnp.einsum("rnm,bmd,rd->bnd", adj, x, lp["rel"], precision=hp)
        y = (jnp.einsum("bnd,do->bno", x, lp["w1"], precision=hp)
             + jnp.einsum("bnd,do->bno", u, lp["w2"], precision=hp)
             + lp["bias"])
        mean = jnp.mean(y, axis=-1, keepdims=True)
        var = jnp.mean((y - mean) ** 2, axis=-1, keepdims=True)
        y = (y - mean) * jax.lax.rsqrt(var + 1e-5) * lp["gamma"] + lp["beta"]
        x = jnp.maximum(y, 0.0) + x
    return x


# ----------------------------------------------------------------------------
if __name__ == "__main__":
    key = jax.random.PRNGKey(0)

    NUM_NODE = 16        # nodes of the relation graph (= #relations of base KG)
    NUM_REL = 4          # multirelational rel-graph edge types: hh, tt, ht, th
    DIM = 32             # input_dim == hidden (short_cut on every layer)
    NUM_LAYERS = 3
    NUM_EDGES = 64
    BATCH = 2            # len(r_idx)

    # Deterministic synthetic relation graph -> dense per-relation adjacency.
    key, ke1, ke2, ke3 = jax.random.split(key, 4)
    src = jax.random.randint(ke1, (NUM_EDGES,), 0, NUM_NODE)
    dst = jax.random.randint(ke2, (NUM_EDGES,), 0, NUM_NODE)
    rel = jax.random.randint(ke3, (NUM_EDGES,), 0, NUM_REL)
    adj = jnp.zeros((NUM_REL, NUM_NODE, NUM_NODE), jnp.float32)
    adj = adj.at[rel, dst, src].add(1.0)          # A[r, dst, src] = edge count

    r_idx = jnp.array([3, 11], dtype=jnp.int32)   # h_index / query relation ids

    key, kp = jax.random.split(key)
    params = init_params(kp, NUM_REL, DIM, NUM_LAYERS)

    out = rel_nbfnet_forward(params, adj, r_idx, NUM_NODE, DIM)
    out = jax.block_until_ready(out)

    ref = reference_forward(params, adj, r_idx, NUM_NODE, DIM)
    assert out.shape == (BATCH, NUM_NODE, DIM)
    err = jnp.max(jnp.abs(out - ref))
    assert jnp.allclose(out, ref, atol=1e-4, rtol=1e-4), f"mismatch vs reference: {err}"

    print("KERNEL_OK")
</pallas_src>

<mosaic_0001>
module attributes {stable_mosaic.version = 11 : i64} {
  func.func @_rel_nbf_fused_kernel(%arg0: memref<16x64xf32, #tpu.memory_space<vmem>>, %arg1: memref<16x64xf32, #tpu.memory_space<vmem>>, %arg2: memref<3x64x64xf32, #tpu.memory_space<vmem>>, %arg3: memref<3x64x64xf32, #tpu.memory_space<vmem>>, %arg4: memref<3x64x64xf32, #tpu.memory_space<vmem>>, %arg5: memref<3x1x64xf32, #tpu.memory_space<vmem>>, %arg6: memref<3x1x64xf32, #tpu.memory_space<vmem>>, %arg7: memref<3x1x64xf32, #tpu.memory_space<vmem>>, %arg8: memref<64x64xf32, #tpu.memory_space<vmem>>, %arg9: memref<16x64xf32, #tpu.memory_space<vmem>>) attributes {dimension_semantics = [], scalar_prefetch = 0 : i64, scratch_operands = 0 : i64, tpu.core_type = #tpu.core_type<tc>} {
    %c0 = arith.constant 0 : index
    %c0_0 = arith.constant 0 : index
    %0 = vector.load %arg0[%c0, %c0_0] : memref<16x64xf32, #tpu.memory_space<vmem>>, vector<16x64xf32>
    %c0_1 = arith.constant 0 : index
    %c0_2 = arith.constant 0 : index
    %1 = vector.load %arg8[%c0_1, %c0_2] : memref<64x64xf32, #tpu.memory_space<vmem>>, vector<64x64xf32>
    %c0_3 = arith.constant 0 : index
    %c0_4 = arith.constant 0 : index
    %2 = vector.load %arg1[%c0_3, %c0_4] : memref<16x64xf32, #tpu.memory_space<vmem>>, vector<16x64xf32>
    %3 = tpu.concatenate %2, %2, %2, %2 in 0 : vector<16x64xf32>, vector<16x64xf32>, vector<16x64xf32>, vector<16x64xf32> -> vector<64x64xf32>
    %c0_5 = arith.constant 0 : index
    %c0_6 = arith.constant 0 : index
    %c0_7 = arith.constant 0 : index
    %4 = vector.load %arg2[%c0_5, %c0_6, %c0_7] : memref<3x64x64xf32, #tpu.memory_space<vmem>>, vector<1x64x64xf32>
    %5 = vector.shape_cast %4 : vector<1x64x64xf32> to vector<64x64xf32>
    %6 = arith.mulf %5, %3 : vector<64x64xf32>
    %cst = arith.constant dense<0.000000e+00> : vector<16x64xf32>
    %7 = tpu.matmul %0, %6, %cst {dimension_numbers = #tpu.dot_dimension_numbers<[1], [0], [0], [1], [0, 0, 1, 1], [], []>} : vector<16x64xf32>, vector<64x64xf32>, vector<16x64xf32> -> vector<16x64xf32>
    %8 = arith.addf %2, %7 : vector<16x64xf32>
    %c0_8 = arith.constant 0 : index
    %c0_9 = arith.constant 0 : index
    %c0_10 = arith.constant 0 : index
    %9 = vector.load %arg3[%c0_8, %c0_9, %c0_10] : memref<3x64x64xf32, #tpu.memory_space<vmem>>, vector<1x64x64xf32>
    %10 = vector.shape_cast %9 : vector<1x64x64xf32> to vector<64x64xf32>
    %cst_11 = arith.constant dense<0.000000e+00> : vector<16x64xf32>
    %11 = tpu.matmul %2, %10, %cst_11 {dimension_numbers = #tpu.dot_dimension_numbers<[1], [0], [0], [1], [0, 0, 1, 1], [], []>} : vector<16x64xf32>, vector<64x64xf32>, vector<16x64xf32> -> vector<16x64xf32>
    %c0_12 = arith.constant 0 : index
    %c0_13 = arith.constant 0 : index
    %c0_14 = arith.constant 0 : index
    %12 = vector.load %arg4[%c0_12, %c0_13, %c0_14] : memref<3x64x64xf32, #tpu.memory_space<vmem>>, vector<1x64x64xf32>
    %13 = vector.shape_cast %12 : vector<1x64x64xf32> to vector<64x64xf32>
    %cst_15 = arith.constant dense<0.000000e+00> : vector<16x64xf32>
    %14 = tpu.matmul %8, %13, %cst_15 {dimension_numbers = #tpu.dot_dimension_numbers<[1], [0], [0], [1], [0, 0, 1, 1], [], []>} : vector<16x64xf32>, vector<64x64xf32>, vector<16x64xf32> -> vector<16x64xf32>
    %15 = arith.addf %11, %14 : vector<16x64xf32>
    %c0_16 = arith.constant 0 : index
    %c0_17 = arith.constant 0 : index
    %c0_18 = arith.constant 0 : index
    %16 = vector.load %arg5[%c0_16, %c0_17, %c0_18] : memref<3x1x64xf32, #tpu.memory_space<vmem>>, vector<1x1x64xf32>
    %17 = vector.shape_cast %16 : vector<1x1x64xf32> to vector<1x64xf32>
    %18 = vector.broadcast %17 : vector<1x64xf32> to vector<16x64xf32>
    %19 = arith.addf %15, %18 : vector<16x64xf32>
    %cst_19 = arith.constant dense<0.000000e+00> : vector<16x64xf32>
    %20 = tpu.matmul %19, %1, %cst_19 {dimension_numbers = #tpu.dot_dimension_numbers<[1], [0], [0], [1], [0, 0, 1, 1], [], []>} : vector<16x64xf32>, vector<64x64xf32>, vector<16x64xf32> -> vector<16x64xf32>
    %21 = arith.subf %19, %20 : vector<16x64xf32>
    %22 = arith.mulf %21, %21 : vector<16x64xf32>
    %cst_20 = arith.constant dense<0.000000e+00> : vector<16x64xf32>
    %23 = tpu.matmul %22, %1, %cst_20 {dimension_numbers = #tpu.dot_dimension_numbers<[1], [0], [0], [1], [0, 0, 1, 1], [], []>} : vector<16x64xf32>, vector<64x64xf32>, vector<16x64xf32> -> vector<16x64xf32>
    %cst_21 = arith.constant 9.99999974E-6 : f32
    %24 = vector.broadcast %cst_21 : f32 to vector<16x64xf32>
    %25 = arith.addf %23, %24 : vector<16x64xf32>
    %26 = math.rsqrt %25 : vector<16x64xf32>
    %27 = arith.mulf %21, %26 : vector<16x64xf32>
    %c0_22 = arith.constant 0 : index
    %c0_23 = arith.constant 0 : index
    %c0_24 = arith.constant 0 : index
    %28 = vector.load %arg6[%c0_22, %c0_23, %c0_24] : memref<3x1x64xf32, #tpu.memory_space<vmem>>, vector<1x1x64xf32>
    %29 = vector.shape_cast %28 : vector<1x1x64xf32> to vector<1x64xf32>
    %30 = vector.broadcast %29 : vector<1x64xf32> to vector<16x64xf32>
    %31 = arith.mulf %27, %30 : vector<16x64xf32>
    %c0_25 = arith.constant 0 : index
    %c0_26 = arith.constant 0 : index
    %c0_27 = arith.constant 0 : index
    %32 = vector.load %arg7[%c0_25, %c0_26, %c0_27] : memref<3x1x64xf32, #tpu.memory_space<vmem>>, vector<1x1x64xf32>
    %33 = vector.shape_cast %32 : vector<1x1x64xf32> to vector<1x64xf32>
    %34 = vector.broadcast %33 : vector<1x64xf32> to vector<16x64xf32>
    %35 = arith.addf %31, %34 : vector<16x64xf32>
    %cst_28 = arith.constant 0.000000e+00 : f32
    %36 = vector.broadcast %cst_28 : f32 to vector<16x64xf32>
    %37 = arith.maximumf %35, %36 : vector<16x64xf32>
    %38 = arith.addf %37, %2 : vector<16x64xf32>
    %39 = tpu.concatenate %38, %38, %38, %38 in 0 : vector<16x64xf32>, vector<16x64xf32>, vector<16x64xf32>, vector<16x64xf32> -> vector<64x64xf32>
    %c1 = arith.constant 1 : index
    %c0_29 = arith.constant 0 : index
    %c0_30 = arith.constant 0 : index
    %40 = vector.load %arg2[%c1, %c0_29, %c0_30] : memref<3x64x64xf32, #tpu.memory_space<vmem>>, vector<1x64x64xf32>
    %41 = vector.shape_cast %40 : vector<1x64x64xf32> to vector<64x64xf32>
    %42 = arith.mulf %41, %39 : vector<64x64xf32>
    %cst_31 = arith.constant dense<0.000000e+00> : vector<16x64xf32>
    %43 = tpu.matmul %0, %42, %cst_31 {dimension_numbers = #tpu.dot_dimension_numbers<[1], [0], [0], [1], [0, 0, 1, 1], [], []>} : vector<16x64xf32>, vector<64x64xf32>, vector<16x64xf32> -> vector<16x64xf32>
    %44 = arith.addf %2, %43 : vector<16x64xf32>
    %c1_32 = arith.constant 1 : index
    %c0_33 = arith.constant 0 : index
    %c0_34 = arith.constant 0 : index
    %45 = vector.load %arg3[%c1_32, %c0_33, %c0_34] : memref<3x64x64xf32, #tpu.memory_space<vmem>>, vector<1x64x64xf32>
    %46 = vector.shape_cast %45 : vector<1x64x64xf32> to vector<64x64xf32>
    %cst_35 = arith.constant dense<0.000000e+00> : vector<16x64xf32>
    %47 = tpu.matmul %38, %46, %cst_35 {dimension_numbers = #tpu.dot_dimension_numbers<[1], [0], [0], [1], [0, 0, 1, 1], [], []>} : vector<16x64xf32>, vector<64x64xf32>, vector<16x64xf32> -> vector<16x64xf32>
    %c1_36 = arith.constant 1 : index
    %c0_37 = arith.constant 0 : index
    %c0_38 = arith.constant 0 : index
    %48 = vector.load %arg4[%c1_36, %c0_37, %c0_38] : memref<3x64x64xf32, #tpu.memory_space<vmem>>, vector<1x64x64xf32>
    %49 = vector.shape_cast %48 : vector<1x64x64xf32> to vector<64x64xf32>
    %cst_39 = arith.constant dense<0.000000e+00> : vector<16x64xf32>
    %50 = tpu.matmul %44, %49, %cst_39 {dimension_numbers = #tpu.dot_dimension_numbers<[1], [0], [0], [1], [0, 0, 1, 1], [], []>} : vector<16x64xf32>, vector<64x64xf32>, vector<16x64xf32> -> vector<16x64xf32>
    %51 = arith.addf %47, %50 : vector<16x64xf32>
    %c1_40 = arith.constant 1 : index
    %c0_41 = arith.constant 0 : index
    %c0_42 = arith.constant 0 : index
    %52 = vector.load %arg5[%c1_40, %c0_41, %c0_42] : memref<3x1x64xf32, #tpu.memory_space<vmem>>, vector<1x1x64xf32>
    %53 = vector.shape_cast %52 : vector<1x1x64xf32> to vector<1x64xf32>
    %54 = vector.broadcast %53 : vector<1x64xf32> to vector<16x64xf32>
    %55 = arith.addf %51, %54 : vector<16x64xf32>
    %cst_43 = arith.constant dense<0.000000e+00> : vector<16x64xf32>
    %56 = tpu.matmul %55, %1, %cst_43 {dimension_numbers = #tpu.dot_dimension_numbers<[1], [0], [0], [1], [0, 0, 1, 1], [], []>} : vector<16x64xf32>, vector<64x64xf32>, vector<16x64xf32> -> vector<16x64xf32>
    %57 = arith.subf %55, %56 : vector<16x64xf32>
    %58 = arith.mulf %57, %57 : vector<16x64xf32>
    %cst_44 = arith.constant dense<0.000000e+00> : vector<16x64xf32>
    %59 = tpu.matmul %58, %1, %cst_44 {dimension_numbers = #tpu.dot_dimension_numbers<[1], [0], [0], [1], [0, 0, 1, 1], [], []>} : vector<16x64xf32>, vector<64x64xf32>, vector<16x64xf32> -> vector<16x64xf32>
    %cst_45 = arith.constant 9.99999974E-6 : f32
    %60 = vector.broadcast %cst_45 : f32 to vector<16x64xf32>
    %61 = arith.addf %59, %60 : vector<16x64xf32>
    %62 = math.rsqrt %61 : vector<16x64xf32>
    %63 = arith.mulf %57, %62 : vector<16x64xf32>
    %c1_46 = arith.constant 1 : index
    %c0_47 = arith.constant 0 : index
    %c0_48 = arith.constant 0 : index
    %64 = vector.load %arg6[%c1_46, %c0_47, %c0_48] : memref<3x1x64xf32, #tpu.memory_space<vmem>>, vector<1x1x64xf32>
    %65 = vector.shape_cast %64 : vector<1x1x64xf32> to vector<1x64xf32>
    %66 = vector.broadcast %65 : vector<1x64xf32> to vector<16x64xf32>
    %67 = arith.mulf %63, %66 : vector<16x64xf32>
    %c1_49 = arith.constant 1 : index
    %c0_50 = arith.constant 0 : index
    %c0_51 = arith.constant 0 : index
    %68 = vector.load %arg7[%c1_49, %c0_50, %c0_51] : memref<3x1x64xf32, #tpu.memory_space<vmem>>, vector<1x1x64xf32>
    %69 = vector.shape_cast %68 : vector<1x1x64xf32> to vector<1x64xf32>
    %70 = vector.broadcast %69 : vector<1x64xf32> to vector<16x64xf32>
    %71 = arith.addf %67, %70 : vector<16x64xf32>
    %cst_52 = arith.constant 0.000000e+00 : f32
    %72 = vector.broadcast %cst_52 : f32 to vector<16x64xf32>
    %73 = arith.maximumf %71, %72 : vector<16x64xf32>
    %74 = arith.addf %73, %38 : vector<16x64xf32>
    %75 = tpu.concatenate %74, %74, %74, %74 in 0 : vector<16x64xf32>, vector<16x64xf32>, vector<16x64xf32>, vector<16x64xf32> -> vector<64x64xf32>
    %c2 = arith.constant 2 : index
    %c0_53 = arith.constant 0 : index
    %c0_54 = arith.constant 0 : index
    %76 = vector.load %arg2[%c2, %c0_53, %c0_54] : memref<3x64x64xf32, #tpu.memory_space<vmem>>, vector<1x64x64xf32>
    %77 = vector.shape_cast %76 : vector<1x64x64xf32> to vector<64x64xf32>
    %78 = arith.mulf %77, %75 : vector<64x64xf32>
    %cst_55 = arith.constant dense<0.000000e+00> : vector<16x64xf32>
    %79 = tpu.matmul %0, %78, %cst_55 {dimension_numbers = #tpu.dot_dimension_numbers<[1], [0], [0], [1], [0, 0, 1, 1], [], []>} : vector<16x64xf32>, vector<64x64xf32>, vector<16x64xf32> -> vector<16x64xf32>
    %80 = arith.addf %2, %79 : vector<16x64xf32>
    %c2_56 = arith.constant 2 : index
    %c0_57 = arith.constant 0 : index
    %c0_58 = arith.constant 0 : index
    %81 = vector.load %arg3[%c2_56, %c0_57, %c0_58] : memref<3x64x64xf32, #tpu.memory_space<vmem>>, vector<1x64x64xf32>
    %82 = vector.shape_cast %81 : vector<1x64x64xf32> to vector<64x64xf32>
    %cst_59 = arith.constant dense<0.000000e+00> : vector<16x64xf32>
    %83 = tpu.matmul %74, %82, %cst_59 {dimension_numbers = #tpu.dot_dimension_numbers<[1], [0], [0], [1], [0, 0, 1, 1], [], []>} : vector<16x64xf32>, vector<64x64xf32>, vector<16x64xf32> -> vector<16x64xf32>
    %c2_60 = arith.constant 2 : index
    %c0_61 = arith.constant 0 : index
    %c0_62 = arith.constant 0 : index
    %84 = vector.load %arg4[%c2_60, %c0_61, %c0_62] : memref<3x64x64xf32, #tpu.memory_space<vmem>>, vector<1x64x64xf32>
    %85 = vector.shape_cast %84 : vector<1x64x64xf32> to vector<64x64xf32>
    %cst_63 = arith.constant dense<0.000000e+00> : vector<16x64xf32>
    %86 = tpu.matmul %80, %85, %cst_63 {dimension_numbers = #tpu.dot_dimension_numbers<[1], [0], [0], [1], [0, 0, 1, 1], [], []>} : vector<16x64xf32>, vector<64x64xf32>, vector<16x64xf32> -> vector<16x64xf32>
    %87 = arith.addf %83, %86 : vector<16x64xf32>
    %c2_64 = arith.constant 2 : index
    %c0_65 = arith.constant 0 : index
    %c0_66 = arith.constant 0 : index
    %88 = vector.load %arg5[%c2_64, %c0_65, %c0_66] : memref<3x1x64xf32, #tpu.memory_space<vmem>>, vector<1x1x64xf32>
    %89 = vector.shape_cast %88 : vector<1x1x64xf32> to vector<1x64xf32>
    %90 = vector.broadcast %89 : vector<1x64xf32> to vector<16x64xf32>
    %91 = arith.addf %87, %90 : vector<16x64xf32>
    %cst_67 = arith.constant dense<0.000000e+00> : vector<16x64xf32>
    %92 = tpu.matmul %91, %1, %cst_67 {dimension_numbers = #tpu.dot_dimension_numbers<[1], [0], [0], [1], [0, 0, 1, 1], [], []>} : vector<16x64xf32>, vector<64x64xf32>, vector<16x64xf32> -> vector<16x64xf32>
    %93 = arith.subf %91, %92 : vector<16x64xf32>
    %94 = arith.mulf %93, %93 : vector<16x64xf32>
    %cst_68 = arith.constant dense<0.000000e+00> : vector<16x64xf32>
    %95 = tpu.matmul %94, %1, %cst_68 {dimension_numbers = #tpu.dot_dimension_numbers<[1], [0], [0], [1], [0, 0, 1, 1], [], []>} : vector<16x64xf32>, vector<64x64xf32>, vector<16x64xf32> -> vector<16x64xf32>
    %cst_69 = arith.constant 9.99999974E-6 : f32
    %96 = vector.broadcast %cst_69 : f32 to vector<16x64xf32>
    %97 = arith.addf %95, %96 : vector<16x64xf32>
    %98 = math.rsqrt %97 : vector<16x64xf32>
    %99 = arith.mulf %93, %98 : vector<16x64xf32>
    %c2_70 = arith.constant 2 : index
    %c0_71 = arith.constant 0 : index
    %c0_72 = arith.constant 0 : index
    %100 = vector.load %arg6[%c2_70, %c0_71, %c0_72] : memref<3x1x64xf32, #tpu.memory_space<vmem>>, vector<1x1x64xf32>
    %101 = vector.shape_cast %100 : vector<1x1x64xf32> to vector<1x64xf32>
    %102 = vector.broadcast %101 : vector<1x64xf32> to vector<16x64xf32>
    %103 = arith.mulf %99, %102 : vector<16x64xf32>
    %c2_73 = arith.constant 2 : index
    %c0_74 = arith.constant 0 : index
    %c0_75 = arith.constant 0 : index
    %104 = vector.load %arg7[%c2_73, %c0_74, %c0_75] : memref<3x1x64xf32, #tpu.memory_space<vmem>>, vector<1x1x64xf32>
    %105 = vector.shape_cast %104 : vector<1x1x64xf32> to vector<1x64xf32>
    %106 = vector.broadcast %105 : vector<1x64xf32> to vector<16x64xf32>
    %107 = arith.addf %103, %106 : vector<16x64xf32>
    %cst_76 = arith.constant 0.000000e+00 : f32
    %108 = vector.broadcast %cst_76 : f32 to vector<16x64xf32>
    %109 = arith.maximumf %107, %108 : vector<16x64xf32>
    %110 = arith.addf %109, %74 : vector<16x64xf32>
    %c0_77 = arith.constant 0 : index
    %c0_78 = arith.constant 0 : index
    %111 = vector.load %arg9[%c0_77, %c0_78] : memref<16x64xf32, #tpu.memory_space<vmem>>, vector<16x64xf32>
    tpu.vector_store %arg9[%c0_77, %c0_78], %110 {strides = array<i32>} : memref<16x64xf32, #tpu.memory_space<vmem>>, vector<16x64xf32>,
    return
  }
}

</mosaic_0001>

<bundles_post_ra>
// kernel: tpu_custom_call.1
= control target key start
LH: loop header
LB: loop body
LE: loop exit
PB: predicated region body
PF: predicated region fallthrough
CT: control target
= control target key end

     0   :  { %14 = vsyncpa [#allocation3], 0  ;;  %s2859_s0 = inlined_call_operand.hbm [shape: f32[16,64], index: 0, kind: input, shape index: {}]   ;;  %s2860_s1 = inlined_call_operand.hbm [shape: f32[16,64], index: 1, kind: input, shape index: {}]   ;;  %s2861_s2 = inlined_call_operand.hbm [shape: f32[3,64,64], index: 2, kind: input, shape index: {}]   ;;  %s2862_s3 = inlined_call_operand.hbm [shape: f32[3,64,64], index: 3, kind: input, shape index: {}]   ;;  %s2863_s4 = inlined_call_operand.hbm [shape: f32[3,64,64], index: 4, kind: input, shape index: {}]   ;;  %s2864_s5 = inlined_call_operand.vmem [shape: f32[3,1,64], index: 5, kind: input, shape index: {}]   ;;  %s2865_s6 = inlined_call_operand.vmem [shape: f32[3,1,64], index: 6, kind: input, shape index: {}]   ;;  %s2866_s7 = inlined_call_operand.vmem [shape: f32[3,1,64], index: 7, kind: input, shape index: {}]   ;;  %s2867_s8 = inlined_call_operand.hbm [shape: f32[64,64], index: 8, kind: input, shape index: {}]   ;;  %s2868_s9 = inlined_call_operand.hbm [shape: f32[16,64], index: 9, kind: output, shape index: {}]  }
   0x1   :  { %15 = vsyncpa [#allocation6], 0 }
   0x2   :  { %16 = vsyncpa [#allocation9], 0 }
   0x3   :  { %17 = vsyncpa [#allocation12], 0 }
   0x4   :  { %18 = vsyncpa [#allocation4], 0  ;;  %s2495_s30 = smov [#allocation5]   ;;  %s2496_s11 = smov [#allocation8]  }
   0x5   :  { %s36_s10 = sshll.u32 %s2495_s30, 4  ;;  %s60_s12 = sshll.u32 %s2496_s11, 4  ;;  %s37_s10 = int_to_ptr.vmem [resolvable:$true] %s36_s10  ;;  %s2554_s12 = int_to_ptr.vmem [resolvable:$true] %s60_s12 }
   0x6   :  { %s2331_s15 = scalar_lea.hbm %s2860_s1, 256 }
   0x7   :  { %p2332_p0 = scmp.ne.s32.totalorder %s2860_s1, %s2331_s15  ;;  %p2335_p1 = scmp.lt.u32.totalorder %s2331_s15, %s2860_s1 }
   0x9   :  { %p2337_p2 = pnand %p2335_p1, %p2332_p0 }
   0xb   :  { %2340 = shalt.err (!%p2337_p2)
}
   0xc   :  { %s2341_s20 = scalar_lea.vmem %s37_s10, 256  ;;  %p2346_p4 = scmp.lt.s32.totalorder %s37_s10, %s37_s10 }
   0xd   :  { %p2342_p3 = scmp.ne.s32.totalorder %s37_s10, %s2341_s20  ;;  %p2347_p5 = scmp.lt.s32.totalorder %s2341_s20, %s2341_s20 }
   0xf   :  { %p2348_p6 = por %p2347_p5, %p2346_p4 }
  0x11   :  { %p2349_p7 = pnand %p2348_p6, %p2342_p3 }
  0x13   :  { %2352 = shalt.err (!%p2349_p7)
}
  0x14   :  { %s2497_s21 = smov 128   ;;  %s2498_s22 = smov 8  }
  0x15   :  { %42 = dma.hbm_to_vmem [thread:$0]  %s2860_s1, 256, %s37_s10, [#allocation6], %s2497_s21, %s2497_s21, %s2498_s22  }
  0x16   :  { %s2353_s27 = scalar_lea.hbm %s2862_s3, 3072 }
  0x17   :  { %p2354_p8 = scmp.ne.s32.totalorder %s2862_s3, %s2353_s27  ;;  %p2357_p9 = scmp.lt.u32.totalorder %s2353_s27, %s2862_s3 }
  0x19   :  { %p2359_p10 = pnand %p2357_p9, %p2354_p8 }
  0x1b   :  { %2362 = shalt.err (!%p2359_p10)
}
  0x1c   :  { %s2363_s13 = scalar_lea.vmem %s2554_s12, 3072  ;;  %p2368_p12 = scmp.lt.s32.totalorder %s2554_s12, %s2554_s12 }
  0x1d   :  { %p2364_p11 = scmp.ne.s32.totalorder %s2554_s12, %s2363_s13  ;;  %p2369_p13 = scmp.lt.s32.totalorder %s2363_s13, %s2363_s13 }
  0x1f   :  { %p2370_p0 = por %p2369_p13, %p2368_p12 }
  0x21   :  { %p2371_p1 = pnand %p2370_p0, %p2364_p11 }
  0x23   :  { %2374 = shalt.err (!%p2371_p1)
}
  0x24   :  { %66 = dma.hbm_to_vmem [thread:$0]  %s2862_s3, 3072, %s2554_s12, [#allocation9], %s2497_s21, %s2497_s21, %s2498_s22  }
  0x25   :  { %s2499_s14 = smov [#allocation2]   ;;  %s2500_s16 = smov [#allocation7]  }
  0x26   :  { %s24_s15 = sshll.u32 %s2499_s14, 4  ;;  %s48_s17 = sshll.u32 %s2500_s16, 4  ;;  %s25_s15 = int_to_ptr.vmem [resolvable:$true] %s24_s15  ;;  %s2591_s17 = int_to_ptr.vmem [resolvable:$true] %s48_s17 }
  0x27   :  { %s2375_s20 = scalar_lea.hbm %s2859_s0, 256 }
  0x28   :  { %p2376_p2 = scmp.ne.s32.totalorder %s2859_s0, %s2375_s20  ;;  %p2379_p3 = scmp.lt.u32.totalorder %s2375_s20, %s2859_s0 }
  0x2a   :  { %p2381_p4 = pnand %p2379_p3, %p2376_p2 }
  0x2c   :  { %2384 = shalt.err (!%p2381_p4)
}
  0x2d   :  { %s2385_s3 = scalar_lea.vmem %s25_s15, 256  ;;  %p2390_p6 = scmp.lt.s32.totalorder %s25_s15, %s25_s15 }
  0x2e   :  { %p2386_p5 = scmp.ne.s32.totalorder %s25_s15, %s2385_s3  ;;  %p2391_p7 = scmp.lt.s32.totalorder %s2385_s3, %s2385_s3 }
  0x30   :  { %p2392_p8 = por %p2391_p7, %p2390_p6 }
  0x32   :  { %p2393_p9 = pnand %p2392_p8, %p2386_p5 }
  0x34   :  { %2396 = shalt.err (!%p2393_p9)
}
  0x35   :  { %30 = dma.hbm_to_vmem [thread:$0]  %s2859_s0, 256, %s25_s15, [#allocation3], %s2497_s21, %s2497_s21, %s2498_s22  }
  0x36   :  { %s2397_s30 = scalar_lea.hbm %s2861_s2, 3072 }
  0x37   :  { %p2398_p10 = scmp.ne.s32.totalorder %s2861_s2, %s2397_s30  ;;  %p2401_p11 = scmp.lt.u32.totalorder %s2397_s30, %s2861_s2 }
  0x39   :  { %p2403_p12 = pnand %p2401_p11, %p2398_p10 }
  0x3b   :  { %2406 = shalt.err (!%p2403_p12)
}
  0x3c   :  { %s2407_s14 = scalar_lea.vmem %s2591_s17, 3072  ;;  %p2412_p0 = scmp.lt.s32.totalorder %s2591_s17, %s2591_s17 }
  0x3d   :  { %p2408_p13 = scmp.ne.s32.totalorder %s2591_s17, %s2407_s14  ;;  %p2413_p1 = scmp.lt.s32.totalorder %s2407_s14, %s2407_s14 }
  0x3f   :  { %p2414_p2 = por %p2413_p1, %p2412_p0 }
  0x41   :  { %p2415_p3 = pnand %p2414_p2, %p2408_p13 }
  0x43   :  { %2418 = shalt.err (!%p2415_p3)
}
  0x44   :  { %54 = dma.hbm_to_vmem [thread:$0]  %s2861_s2, 3072, %s2591_s17, [#allocation6], %s2497_s21, %s2497_s21, %s2498_s22  }
  0x45   :  { %s2501_s16 = smov [#allocation10]   ;;  %s2502_s19 = smov [#allocation11]  }
  0x46   :  { %s72_s18 = sshll.u32 %s2501_s16, 4  ;;  %s90_s20 = sshll.u32 %s2502_s19, 4  ;;  %s73_s18 = int_to_ptr.vmem [resolvable:$true] %s72_s18  ;;  %s2628_s20 = int_to_ptr.vmem [resolvable:$true] %s90_s20 }
  0x47   :  { %s2419_s25 = scalar_lea.hbm %s2863_s4, 3072 }
  0x48   :  { %p2420_p4 = scmp.ne.s32.totalorder %s2863_s4, %s2419_s25  ;;  %p2423_p5 = scmp.lt.u32.totalorder %s2419_s25, %s2863_s4 }
  0x4a   :  { %p2425_p6 = pnand %p2423_p5, %p2420_p4 }
  0x4c   :  { %2428 = shalt.err (!%p2425_p6)
}
  0x4d   :  { %s2429_s2 = scalar_lea.vmem %s73_s18, 3072  ;;  %p2434_p8 = scmp.lt.s32.totalorder %s73_s18, %s73_s18 }
  0x4e   :  { %p2430_p7 = scmp.ne.s32.totalorder %s73_s18, %s2429_s2  ;;  %p2435_p9 = scmp.lt.s32.totalorder %s2429_s2, %s2429_s2 }
  0x50   :  { %p2436_p10 = por %p2435_p9, %p2434_p8 }
  0x52   :  { %p2437_p11 = pnand %p2436_p10, %p2430_p7 }
  0x54   :  { %2440 = shalt.err (!%p2437_p11)
}
  0x55   :  { %78 = dma.hbm_to_vmem [thread:$0]  %s2863_s4, 3072, %s73_s18, [#allocation9], %s2497_s21, %s2497_s21, %s2498_s22  }
  0x56   :  { %s2441_s11 = scalar_lea.hbm %s2867_s8, 1024 }
  0x57   :  { %p2442_p12 = scmp.ne.s32.totalorder %s2867_s8, %s2441_s11  ;;  %p2445_p13 = scmp.lt.u32.totalorder %s2441_s11, %s2867_s8 }
  0x59   :  { %p2447_p0 = pnand %p2445_p13, %p2442_p12 }
  0x5b   :  { %2450 = shalt.err (!%p2447_p0)
}
  0x5c   :  { %s2451_s0 = scalar_lea.vmem %s2628_s20, 1024  ;;  %p2456_p2 = scmp.lt.s32.totalorder %s2628_s20, %s2628_s20 }
  0x5d   :  { %p2452_p1 = scmp.ne.s32.totalorder %s2628_s20, %s2451_s0  ;;  %p2457_p3 = scmp.lt.s32.totalorder %s2451_s0, %s2451_s0 }
  0x5f   :  { %p2458_p4 = por %p2457_p3, %p2456_p2 }
  0x61   :  { %p2459_p5 = pnand %p2458_p4, %p2452_p1 }
  0x63   :  { %2462 = shalt.err (!%p2459_p5)
}
  0x64   :  { %96 = dma.hbm_to_vmem [thread:$0]  %s2867_s8, 1024, %s2628_s20, [#allocation12], %s2497_s21, %s2497_s21, %s2498_s22  }
  0x65   :  { %2485 = dma.done.wait [#allocation3], 256  }
  0x66   :  { %2486 = vsyncadd [#allocation3], 4294967040 }
  0x67   :  { %2487 = dma.done.wait [#allocation6], 3328  }
  0x68   :  { %2488 = vsyncadd [#allocation6], 4294963968 }
  0x69   :  { %2489 = dma.done.wait [#allocation9], 6144  }
  0x6a   :  { %2490 = vsyncadd [#allocation9], 4294961152 }
  0x6b   :  { %2491 = dma.done.wait [#allocation12], 1024  }
  0x6c   :  { %2492 = vsyncadd [#allocation12], 4294966272  ;;  %v2665_v0 = vld [vmem:[#allocation5] sm:$0xff]  ;;  %v2667_v1 = vld [vmem:[#allocation5 + $0x8] sm:$0xff]  ;;  %vm143_vm0 = vcmask 523264   ;;  %s2503_s11 = smov [#allocation13]  }
  0x6d   :  { %v127_v2 = vld [vmem:[#allocation7] sm:$0xff]  ;;  %v128_v3 = vld [vmem:[#allocation7 + $0x8] sm:$0xff]  ;;  %v129_v5 = vld [vmem:[#allocation7 + $0x10] sm:$0xff]  ;;  %s1569_s13 = sshll.u32 %s2503_s11, 4  ;;  %s1570_s13 = int_to_ptr.vmem [resolvable:$true] %s1569_s13 }
  0x6e   :  { %v135_v4 = vmul.f32 %v127_v2, %v2665_v0  ;;  %v130_v6 = vld [vmem:[#allocation7 + $0x18] sm:$0xff]  ;;  %v136_v7 = vmul.f32 %v128_v3, %v2667_v1  ;;  %v137_v8 = vmul.f32 %v129_v5, %v2665_v0  ;;  %v131_v10 = vld [vmem:[#allocation7 + $0x20] sm:$0xff]  ;;  %v132_v11 = vld [vmem:[#allocation7 + $0x28] sm:$0xff]  ;;  %p2468_p7 = scmp.lt.s32.totalorder %s1570_s13, %s1570_s13 }
  0x6f   :  { %v138_v9 = vmul.f32 %v130_v6, %v2667_v1  ;;  %v2673_v12 = vld [vmem:[#allocation2] sm:$0xff]  ;;  %v139_v15 = vmul.f32 %v131_v10, %v2665_v0  ;;  %v140_v16 = vmul.f32 %v132_v11, %v2667_v1  ;;  %v236_v18 = vld [vmem:[#allocation10 + $0x8] sm:$0xff]  ;;  %v237_v19 = vld [vmem:[#allocation10 + $0x10] sm:$0xff] }
  0x70   :  { %v2064_v13 = vpack.c.bf16 %v136_v7, %v135_v4  ;;  %1795 = vmatprep.mubr.msk.f32.mxu0 %vm143_vm0, %v2673_v12  ;;  %v235_v17 = vld [vmem:[#allocation10] sm:$0xff]  ;;  %v133_v20 = vld [vmem:[#allocation7 + $0x30] sm:$0xff]  ;;  %v134_v21 = vld [vmem:[#allocation7 + $0x38] sm:$0xff] }
  0x71   :  { %v2068_v14 = vpack.c.bf16 %v138_v9, %v137_v8  ;;  %v2080_v22 = vpack.c.bf16 %v236_v18, %v235_v17  ;;  %v238_v23 = vld [vmem:[#allocation10 + $0x18] sm:$0xff]  ;;  %v239_v25 = vld [vmem:[#allocation10 + $0x20] sm:$0xff]  ;;  %v240_v26 = vld [vmem:[#allocation10 + $0x28] sm:$0xff]  ;;  %v2072_v27 = vpack.c.bf16 %v140_v16, %v139_v15  ;;  %v141_v28 = vmul.f32 %v133_v20, %v2665_v0 }
  0x72   :  { %2065 = vmatprep.subr.bf16.mxu0 %v2064_v13  ;;  %v2084_v24 = vpack.c.bf16 %v238_v23, %v237_v19  ;;  %v142_v29 = vmul.f32 %v134_v21, %v2667_v1  ;;  %v2088_v30 = vpack.c.bf16 %v240_v26, %v239_v25  ;;  %v2681_v32 = vld [vmem:[#allocation2 + $0x8] sm:$0xff]  ;;  %v241_v33 = vld [vmem:[#allocation10 + $0x30] sm:$0xff]  ;;  %v242_v34 = vld [vmem:[#allocation10 + $0x38] sm:$0xff] }
  0x73   :  { %2067 = vmatpush3.bf16.msra.mxu0 %v2064_v13  ;;  %2081 = vmatprep.subr.bf16.mxu1 %v2080_v22  ;;  %v2092_v35 = vpack.c.bf16 %v242_v34, %v241_v33  ;;  %v227_v36 = vld [vmem:[#allocation8] sm:$0xff]  ;;  %v228_v37 = vld [vmem:[#allocation8 + $0x8] sm:$0xff]  ;;  %v119_v41 = vld [vmem:[#allocation11 + $0x10] sm:$0xff] }
  0x74   :  { %2069 = vmatprep.subr.bf16.mxu0 %v2068_v14  ;;  %2083 = vmatpush3.bf16.msra.mxu1 %v2080_v22  ;;  %v2076_v31 = vpack.c.bf16 %v142_v29, %v141_v28  ;;  %v2096_v38 = vpack.c.bf16 %v228_v37, %v227_v36  ;;  %v117_v39 = vld [vmem:[#allocation11] sm:$0xff]  ;;  %v118_v40 = vld [vmem:[#allocation11 + $0x8] sm:$0xff]  ;;  %v120_v43 = vld [vmem:[#allocation11 + $0x18] sm:$0xff] }
  0x75   :  { %2085 = vmatprep.subr.bf16.mxu1 %v2084_v24  ;;  %v2685_v42 = vpack.c.bf16 %v118_v40, %v117_v39  ;;  %v2687_v44 = vpack.c.bf16 %v120_v43, %v119_v41  ;;  %v121_v45 = vld [vmem:[#allocation11 + $0x20] sm:$0xff]  ;;  %v122_v46 = vld [vmem:[#allocation11 + $0x28] sm:$0xff]  ;;  %v229_v49 = vld [vmem:[#allocation8 + $0x10] sm:$0xff] }
  0x76   :  { %v2692_v47 = vpack.c.bf16 %v122_v46, %v121_v45  ;;  %v230_v50 = vld [vmem:[#allocation8 + $0x18] sm:$0xff]  ;;  %v231_v55 = vld [vmem:[#allocation8 + $0x20] sm:$0xff]  ;;  %v232_v56 = vld [vmem:[#allocation8 + $0x28] sm:$0xff] }
  0x77   :  { %2071 = vmatpush3.bf16.msra.mxu0 %v2068_v14  ;;  %v2100_v54 = vpack.c.bf16 %v230_v50, %v229_v49  ;;  %v2104_v57 = vpack.c.bf16 %v232_v56, %v231_v55  ;;  %v233_v58 = vld [vmem:[#allocation8 + $0x30] sm:$0xff]  ;;  %v234_v59 = vld [vmem:[#allocation8 + $0x38] sm:$0xff]  ;;  %v1590_v2 = vld [vmem:[%s2864_s5] ss:$0 sm:$0xff] }
  0x78   :  { %2073 = vmatprep.subr.bf16.mxu0 %v2072_v27  ;;  %2087 = vmatpush3.bf16.msra.mxu1 %v2084_v24  ;;  %v2108_v60 = vpack.c.bf16 %v234_v59, %v233_v58  ;;  %v123_v61 = vld [vmem:[#allocation11 + $0x30] sm:$0xff]  ;;  %v124_v62 = vld [vmem:[#allocation11 + $0x38] sm:$0xff]  ;;  %v710_v14 = vld [vmem:[#allocation10 + $0x40] sm:$0xff] }
  0x79   :  { %2089 = vmatprep.subr.bf16.mxu1 %v2088_v30  ;;  %v2707_v63 = vpack.c.bf16 %v124_v62, %v123_v61  ;;  %v711_v15 = vld [vmem:[#allocation10 + $0x48] sm:$0xff]  ;;  %v712_v16 = vld [vmem:[#allocation10 + $0x50] sm:$0xff]  ;;  %v713_v18 = vld [vmem:[#allocation10 + $0x58] sm:$0xff] }
  0x7a   :  { %v2160_v17 = vpack.c.bf16 %v711_v15, %v710_v14  ;;  %v2164_v19 = vpack.c.bf16 %v713_v18, %v712_v16  ;;  %v714_v20 = vld [vmem:[#allocation10 + $0x60] sm:$0xff]  ;;  %v715_v21 = vld [vmem:[#allocation10 + $0x68] sm:$0xff]  ;;  %v609_v45 = vld [vmem:[#allocation7 + $0x50] sm:$0xff] }
  0x7b   :  { %2075 = vmatpush3.bf16.msra.mxu0 %v2072_v27  ;;  %v2168_v22 = vpack.c.bf16 %v715_v21, %v714_v20  ;;  %v1595_v28 = vld [vmem:[%s2865_s6] ss:$0 sm:$0xff]  ;;  %v608_v40 = vld [vmem:[#allocation7 + $0x48] sm:$0xff]  ;;  %v610_v46 = vld [vmem:[#allocation7 + $0x58] sm:$0xff] }
  0x7c   :  { %2077 = vmatprep.subr.bf16.mxu0 %v2076_v31  ;;  %2091 = vmatpush3.bf16.msra.mxu1 %v2088_v30  ;;  %v607_v43 = vld [vmem:[#allocation7 + $0x40] sm:$0xff]  ;;  %v613_v59 = vld [vmem:[#allocation7 + $0x70] sm:$0xff] }
  0x7d   :  { %2093 = vmatprep.subr.bf16.mxu1 %v2092_v35  ;;  %v705_v18 = vld [vmem:[#allocation8 + $0x60] sm:$0xff]  ;;  %v707_v21 = vld [vmem:[#allocation8 + $0x70] sm:$0xff] }
  0x7f   :  { %2079 = vmatpush3.bf16.msra.mxu0 %v2076_v31  ;;  %v1596_v31 = vld [vmem:[%s2866_s7] ss:$0 sm:$0xff] }
  0x80   :  { %2095 = vmatpush3.bf16.msra.mxu1 %v2092_v35  ;;  %2113 = vmatprep.subr.bf16.mxu0 %v2685_v42 }
  0x81   :  { %2097 = vmatprep.subr.bf16.mxu1 %v2096_v38 }
  0x82   :  { %1796 = vmatmul.mubr.msk.f32.vlgmr.msra.gmra.mrb[0].mxu0 %vm143_vm0, %v2681_v32 }
  0x83   :  { %2115 = vmatpush3.bf16.msra.mxu0 %v2685_v42 }
  0x84   :  { %2117 = vmatprep.subr.bf16.mxu0 %v2687_v44 }
  0x87   :  { %2119 = vmatpush3.bf16.msra.mxu0 %v2687_v44 }
  0x88   :  { %2121 = vmatprep.subr.bf16.mxu0 %v2692_v47 }
  0x8b   :  { %2123 = vmatpush3.bf16.msra.mxu0 %v2692_v47 }
  0x8c   :  { %2125 = vmatprep.subr.bf16.mxu0 %v2707_v63 }
  0x8f   :  { %2127 = vmatpush3.bf16.msra.mxu0 %v2707_v63 }
  0x90   :  { %2129 = vmatprep.subr.bf16.mxu0 %v2685_v42 }
 0x155   :  { %v1797_v48 = vpop.f32.mrb[0].mxu0 }
 0x156   :  { %v216_v51 = vpop.f32.mrb[1].mxu0  ;;  %v226_v53 = vadd.f32 %v1797_v48, %v2667_v1 }
 0x157   :  { %v225_v52 = vadd.f32 %v216_v51, %v2665_v0 }
 0x159   :  { %1814 = vmatprep.mubr.msk.f32.mxu1 %vm143_vm0, %v225_v52 }
 0x15a   :  { %1815 = vmatmul.mubr.msk.f32.vlgmr.msra.gmra.mrb[0].mxu1 %vm143_vm0, %v226_v53  ;;  %v611_v53 = vld [vmem:[#allocation7 + $0x60] sm:$0xff] }
 0x15b   :  { %2099 = vmatpush3.bf16.msra.mxu1 %v2096_v38  ;;  %1833 = vmatprep.mubr.msk.f32.mxu1 %vm143_vm0, %v2665_v0 }
 0x15c   :  { %2101 = vmatprep.subr.bf16.mxu1 %v2100_v54 }
 0x15f   :  { %2103 = vmatpush3.bf16.msra.mxu1 %v2100_v54  ;;  %v612_v54 = vld [vmem:[#allocation7 + $0x68] sm:$0xff] }
 0x160   :  { %2105 = vmatprep.subr.bf16.mxu1 %v2104_v57 }
 0x163   :  { %2107 = vmatpush3.bf16.msra.mxu1 %v2104_v57 }
 0x164   :  { %2109 = vmatprep.subr.bf16.mxu1 %v2108_v60 }
 0x167   :  { %2111 = vmatpush3.bf16.msra.mxu1 %v2108_v60  ;;  %v614_v60 = vld [vmem:[#allocation7 + $0x78] sm:$0xff] }
 0x16a   :  { %1834 = vmatmul.mubr.msk.f32.vlgmr.msra.gmra.mrb[0].mxu1 %vm143_vm0, %v2667_v1 }
 0x16b   :  { %1890 = vmatprep.mubr.msk.f32.mxu1 %vm143_vm0, %v2673_v12 }
 0x23d   :  { %v1835_v3 = vpop.f32.mrb[0].mxu1 }
 0x23e   :  { %v396_v4 = vpop.f32.mrb[1].mxu1  ;;  %v413_v6 = vadd.f32 %v1835_v3, %v1590_v2 }
 0x23f   :  { %v412_v5 = vadd.f32 %v1590_v2, %v396_v4  ;;  %v716_v4 = vld [vmem:[#allocation10 + $0x70] sm:$0xff] }
 0x241   :  { %1852 = vmatprep.mubr.msk.f32.mxu0 %vm143_vm0, %v412_v5 }
 0x242   :  { %1853 = vmatmul.mubr.msk.f32.vlgmr.msra.gmra.mrb[2].mxu0 %vm143_vm0, %v413_v6 }
 0x243   :  { %2131 = vmatpush3.bf16.msra.mxu0 %v2685_v42 }
 0x244   :  { %2133 = vmatprep.subr.bf16.mxu0 %v2687_v44 }
 0x247   :  { %2135 = vmatpush3.bf16.msra.mxu0 %v2687_v44 }
 0x248   :  { %2137 = vmatprep.subr.bf16.mxu0 %v2692_v47 }
 0x24b   :  { %2139 = vmatpush3.bf16.msra.mxu0 %v2692_v47 }
 0x24c   :  { %2141 = vmatprep.subr.bf16.mxu0 %v2707_v63 }
 0x24f   :  { %2143 = vmatpush3.bf16.msra.mxu0 %v2707_v63 }
 0x250   :  { %2161 = vmatprep.subr.bf16.mxu0 %v2160_v17 }
 0x315   :  { %v1854_v7 = vpop.f32.mrb[2].mxu0 }
 0x316   :  { %v496_v8 = vsub.f32 %v413_v6, %v1854_v7  ;;  %v486_v9 = vpop.f32.mrb[3].mxu0  ;;  %v701_v7 = vld [vmem:[#allocation8 + $0x40] sm:$0xff] }
 0x317   :  { %v495_v10 = vsub.f32 %v412_v5, %v486_v9  ;;  %v717_v5 = vld [vmem:[#allocation10 + $0x78] sm:$0xff] }
 0x318   :  { %v498_v13 = vmul.f32 %v496_v8, %v496_v8  ;;  %v2172_v6 = vpack.c.bf16 %v717_v5, %v716_v4  ;;  %v1086_v4 = vld [vmem:[#allocation7 + $0x88] sm:$0xff] }
 0x319   :  { %v497_v11 = vmul.f32 %v495_v10, %v495_v10 }
 0x31b   :  { %1871 = vmatprep.mubr.msk.f32.mxu0 %vm143_vm0, %v497_v11  ;;  %v703_v11 = vld [vmem:[#allocation8 + $0x50] sm:$0xff] }
 0x31c   :  { %1872 = vmatmul.mubr.msk.f32.vlgmr.msra.gmra.mrb[4].mxu0 %vm143_vm0, %v498_v13  ;;  %v704_v13 = vld [vmem:[#allocation8 + $0x58] sm:$0xff] }
 0x31d   :  { %2163 = vmatpush3.bf16.msra.mxu0 %v2160_v17  ;;  %v2180_v17 = vpack.c.bf16 %v704_v13, %v703_v11 }
 0x31e   :  { %2165 = vmatprep.subr.bf16.mxu0 %v2164_v19 }
 0x321   :  { %2167 = vmatpush3.bf16.msra.mxu0 %v2164_v19  ;;  %v706_v19 = vld [vmem:[#allocation8 + $0x68] sm:$0xff] }
 0x322   :  { %2169 = vmatprep.subr.bf16.mxu0 %v2168_v22  ;;  %v2184_v20 = vpack.c.bf16 %v706_v19, %v705_v18 }
 0x325   :  { %2171 = vmatpush3.bf16.msra.mxu0 %v2168_v22  ;;  %v708_v22 = vld [vmem:[#allocation8 + $0x78] sm:$0xff] }
 0x326   :  { %2173 = vmatprep.subr.bf16.mxu0 %v2172_v6 }
 0x329   :  { %2175 = vmatpush3.bf16.msra.mxu0 %v2172_v6  ;;  %v1085_v6 = vld [vmem:[#allocation7 + $0x80] sm:$0xff] }
 0x3ef   :  { %v1873_v23 = vpop.f32.mrb[4].mxu0 }
 0x3f0   :  { %v577_v24 = vadd.f32 1e-05, %v1873_v23  ;;  %v571_v25 = vpop.f32.mrb[5].mxu0  ;;  %v2188_v23 = vpack.c.bf16 %v708_v22, %v707_v21 }
 0x3f1   :  { %v572_v26 = vadd.f32 1e-05, %v571_v25 }
 0x3f2   :  { %2319 = vrsqrt.f32 %v577_v24  ;;  %v1604_v24 = vld [vmem:[%s2864_s5 + $0x1] ss:$0 sm:$0xff] }
 0x3f3   :  { %2321 = vrsqrt.f32 %v572_v26 }
 0x3fc   :  { %v2320_v27 = vpop.eup %2319 }
 0x3fd   :  { %v2322_v29 = vpop.eup %2321  ;;  %v583_v30 = vmul.f32 %v2320_v27, %v496_v8  ;;  %v702_v8 = vld [vmem:[#allocation8 + $0x48] sm:$0xff] }
 0x3fe   :  { %v582_v33 = vmul.f32 %v2322_v29, %v495_v10  ;;  %v2176_v9 = vpack.c.bf16 %v702_v8, %v701_v7  ;;  %v1087_v7 = vld [vmem:[#allocation7 + $0x90] sm:$0xff]  ;;  %v1088_v8 = vld [vmem:[#allocation7 + $0x98] sm:$0xff] }
 0x3ff   :  { %v592_v34 = vmul.f32 %v1595_v28, %v583_v30 }
 0x400   :  { %v591_v35 = vmul.f32 %v1595_v28, %v582_v33  ;;  %2177 = vmatprep.subr.bf16.mxu0 %v2176_v9 }
 0x401   :  { %v601_v36 = vadd.f32 %v1596_v31, %v592_v34 }
 0x402   :  { %v600_v37 = vadd.f32 %v1596_v31, %v591_v35  ;;  %v1188_v35 = vld [vmem:[#allocation10 + $0x80] sm:$0xff] }
 0x403   :  { %v603_v38 = vmax.f32 %v601_v36, 0.0  ;;  %v1189_v36 = vld [vmem:[#allocation10 + $0x88] sm:$0xff] }
 0x404   :  { %v602_v39 = vmax.f32 %v600_v37, 0.0  ;;  %v1190_v37 = vld [vmem:[#allocation10 + $0x90] sm:$0xff] }
 0x405   :  { %v2733_v41 = vadd.f32 %v603_v38, %v2667_v1  ;;  %v2240_v38 = vpack.c.bf16 %v1189_v36, %v1188_v35 }
 0x406   :  { %v2736_v48 = vadd.f32 %v602_v39, %v2665_v0  ;;  %v1191_v39 = vld [vmem:[#allocation10 + $0x98] sm:$0xff] }
 0x407   :  { %v616_v49 = vmul.f32 %v608_v40, %v2733_v41  ;;  %v618_v52 = vmul.f32 %v610_v46, %v2733_v41  ;;  %v620_v58 = vmul.f32 %v612_v54, %v2733_v41  ;;  %v622_v2 = vmul.f32 %v614_v60, %v2733_v41  ;;  %v1610_v54 = vld [vmem:[%s2865_s6 + $0x1] ss:$0 sm:$0xff] }
 0x408   :  { %v615_v50 = vmul.f32 %v607_v43, %v2736_v48  ;;  %v617_v51 = vmul.f32 %v609_v45, %v2736_v48  ;;  %v619_v57 = vmul.f32 %v611_v53, %v2736_v48  ;;  %v621_v62 = vmul.f32 %v613_v59, %v2736_v48  ;;  %v1192_v43 = vld [vmem:[#allocation10 + $0xa0] sm:$0xff]  ;;  %v1193_v45 = vld [vmem:[#allocation10 + $0xa8] sm:$0xff] }
 0x409   :  { %v2244_v40 = vpack.c.bf16 %v1191_v39, %v1190_v37  ;;  %v2248_v46 = vpack.c.bf16 %v1193_v45, %v1192_v43  ;;  %v1183_v37 = vld [vmem:[#allocation8 + $0xa0] sm:$0xff]  ;;  %v1186_v43 = vld [vmem:[#allocation8 + $0xb8] sm:$0xff] }
 0x40a   :  { %v2144_v55 = vpack.c.bf16 %v616_v49, %v615_v50  ;;  %v2148_v56 = vpack.c.bf16 %v618_v52, %v617_v51  ;;  %v2152_v61 = vpack.c.bf16 %v620_v58, %v619_v57  ;;  %v2156_v3 = vpack.c.bf16 %v622_v2, %v621_v62  ;;  %v1612_v57 = vld [vmem:[%s2866_s7 + $0x1] ss:$0 sm:$0xff] }
 0x40c   :  { %2145 = vmatprep.subr.bf16.mxu1 %v2144_v55 }
 0x40d   :  { %2147 = vmatpush3.bf16.msra.mxu1 %v2144_v55 }
 0x40e   :  { %2149 = vmatprep.subr.bf16.mxu1 %v2148_v56 }
 0x411   :  { %2151 = vmatpush3.bf16.msra.mxu1 %v2148_v56 }
 0x412   :  { %2153 = vmatprep.subr.bf16.mxu1 %v2152_v61 }
 0x415   :  { %2155 = vmatpush3.bf16.msra.mxu1 %v2152_v61 }
 0x416   :  { %2157 = vmatprep.subr.bf16.mxu1 %v2156_v3 }
 0x419   :  { %2159 = vmatpush3.bf16.msra.mxu1 %v2156_v3 }
 0x41a   :  { %2193 = vmatprep.subr.bf16.mxu1 %v2685_v42 }
 0x41c   :  { %1891 = vmatmul.mubr.msk.f32.vlgmr.msra.gmra.mrb[2].mxu1 %vm143_vm0, %v2681_v32 }
 0x41d   :  { %2195 = vmatpush3.bf16.msra.mxu1 %v2685_v42 }
 0x41e   :  { %2197 = vmatprep.subr.bf16.mxu1 %v2687_v44 }
 0x421   :  { %2199 = vmatpush3.bf16.msra.mxu1 %v2687_v44 }
 0x422   :  { %2201 = vmatprep.subr.bf16.mxu1 %v2692_v47 }
 0x425   :  { %2203 = vmatpush3.bf16.msra.mxu1 %v2692_v47 }
 0x426   :  { %2205 = vmatprep.subr.bf16.mxu1 %v2707_v63 }
 0x429   :  { %2207 = vmatpush3.bf16.msra.mxu1 %v2707_v63 }
 0x42a   :  { %2209 = vmatprep.subr.bf16.mxu1 %v2685_v42 }
 0x4ef   :  { %v1892_v10 = vpop.f32.mrb[2].mxu1 }
 0x4f0   :  { %v689_v14 = vpop.f32.mrb[3].mxu1  ;;  %v699_v16 = vadd.f32 %v1892_v10, %v2667_v1 }
 0x4f1   :  { %v698_v15 = vadd.f32 %v689_v14, %v2665_v0 }
 0x4f3   :  { %1909 = vmatprep.mubr.msk.f32.mxu0 %vm143_vm0, %v698_v15  ;;  %v1089_v15 = vld [vmem:[#allocation7 + $0xa0] sm:$0xff] }
 0x4f4   :  { %1910 = vmatmul.mubr.msk.f32.vlgmr.msra.gmra.mrb[6].mxu0 %vm143_vm0, %v699_v16  ;;  %v1090_v16 = vld [vmem:[#allocation7 + $0xa8] sm:$0xff] }
 0x4f5   :  { %2179 = vmatpush3.bf16.msra.mxu0 %v2176_v9  ;;  %1928 = vmatprep.mubr.msk.f32.mxu0 %vm143_vm0, %v2736_v48 }
 0x4f6   :  { %2181 = vmatprep.subr.bf16.mxu0 %v2180_v17 }
 0x4f9   :  { %2183 = vmatpush3.bf16.msra.mxu0 %v2180_v17 }
 0x4fa   :  { %2185 = vmatprep.subr.bf16.mxu0 %v2184_v20 }
 0x4fd   :  { %2187 = vmatpush3.bf16.msra.mxu0 %v2184_v20  ;;  %v1092_v20 = vld [vmem:[#allocation7 + $0xb8] sm:$0xff] }
 0x4fe   :  { %2189 = vmatprep.subr.bf16.mxu0 %v2188_v23 }
 0x501   :  { %2191 = vmatpush3.bf16.msra.mxu0 %v2188_v23 }
 0x504   :  { %1929 = vmatmul.mubr.msk.f32.vlgmr.msra.gmra.mrb[6].mxu0 %vm143_vm0, %v2733_v41 }
 0x505   :  { %1985 = vmatprep.mubr.msk.f32.mxu0 %vm143_vm0, %v2673_v12 }
 0x5d7   :  { %v1930_v25 = vpop.f32.mrb[6].mxu0 }
 0x5d8   :  { %v871_v26 = vpop.f32.mrb[7].mxu0  ;;  %v889_v28 = vadd.f32 %v1930_v25, %v1604_v24  ;;  %v1194_v25 = vld [vmem:[#allocation10 + $0xb0] sm:$0xff] }
 0x5d9   :  { %v888_v27 = vadd.f32 %v1604_v24, %v871_v26  ;;  %v1195_v26 = vld [vmem:[#allocation10 + $0xb8] sm:$0xff] }
 0x5db   :  { %1947 = vmatprep.mubr.msk.f32.mxu1 %vm143_vm0, %v888_v27 }
 0x5dc   :  { %1948 = vmatmul.mubr.msk.f32.vlgmr.msra.gmra.mrb[4].mxu1 %vm143_vm0, %v889_v28 }
 0x5dd   :  { %2211 = vmatpush3.bf16.msra.mxu1 %v2685_v42 }
 0x5de   :  { %2213 = vmatprep.subr.bf16.mxu1 %v2687_v44 }
 0x5e1   :  { %2215 = vmatpush3.bf16.msra.mxu1 %v2687_v44 }
 0x5e2   :  { %2217 = vmatprep.subr.bf16.mxu1 %v2692_v47 }
 0x5e5   :  { %2219 = vmatpush3.bf16.msra.mxu1 %v2692_v47 }
 0x5e6   :  { %2221 = vmatprep.subr.bf16.mxu1 %v2707_v63 }
 0x5e9   :  { %2223 = vmatpush3.bf16.msra.mxu1 %v2707_v63 }
 0x5ea   :  { %2241 = vmatprep.subr.bf16.mxu1 %v2240_v38 }
 0x6af   :  { %v1949_v12 = vpop.f32.mrb[4].mxu1 }
 0x6b0   :  { %v972_v29 = vsub.f32 %v889_v28, %v1949_v12  ;;  %v962_v30 = vpop.f32.mrb[5].mxu1  ;;  %v1180_v28 = vld [vmem:[#allocation8 + $0x88] sm:$0xff] }
 0x6b1   :  { %v971_v31 = vsub.f32 %v888_v27, %v962_v30  ;;  %v2252_v27 = vpack.c.bf16 %v1195_v26, %v1194_v25  ;;  %v1181_v30 = vld [vmem:[#allocation8 + $0x90] sm:$0xff] }
 0x6b2   :  { %v974_v34 = vmul.f32 %v972_v29, %v972_v29 }
 0x6b3   :  { %v973_v33 = vmul.f32 %v971_v31, %v971_v31 }
 0x6b5   :  { %1966 = vmatprep.mubr.msk.f32.mxu1 %vm143_vm0, %v973_v33 }
 0x6b6   :  { %1967 = vmatmul.mubr.msk.f32.vlgmr.msra.gmra.mrb[6].mxu1 %vm143_vm0, %v974_v34 }
 0x6b7   :  { %2243 = vmatpush3.bf16.msra.mxu1 %v2240_v38  ;;  %v1184_v38 = vld [vmem:[#allocation8 + $0xa8] sm:$0xff] }
 0x6b8   :  { %2245 = vmatprep.subr.bf16.mxu1 %v2244_v40  ;;  %v2264_v39 = vpack.c.bf16 %v1184_v38, %v1183_v37 }
 0x6bb   :  { %2247 = vmatpush3.bf16.msra.mxu1 %v2244_v40  ;;  %v1185_v40 = vld [vmem:[#allocation8 + $0xb0] sm:$0xff] }
 0x6bc   :  { %2249 = vmatprep.subr.bf16.mxu1 %v2248_v46 }
 0x6bf   :  { %2251 = vmatpush3.bf16.msra.mxu1 %v2248_v46 }
 0x6c0   :  { %2253 = vmatprep.subr.bf16.mxu1 %v2252_v27 }
 0x6c3   :  { %2255 = vmatpush3.bf16.msra.mxu1 %v2252_v27 }
 0x789   :  { %v1968_v49 = vpop.f32.mrb[6].mxu1 }
 0x78a   :  { %v1053_v50 = vadd.f32 1e-05, %v1968_v49  ;;  %v1047_v51 = vpop.f32.mrb[7].mxu1 }
 0x78b   :  { %v1048_v52 = vadd.f32 1e-05, %v1047_v51 }
 0x78c   :  { %2323 = vrsqrt.f32 %v1053_v50 }
 0x78d   :  { %2325 = vrsqrt.f32 %v1048_v52 }
 0x796   :  { %v2324_v53 = vpop.eup %2323 }
 0x797   :  { %v2326_v55 = vpop.eup %2325  ;;  %v1059_v56 = vmul.f32 %v2324_v53, %v972_v29 }
 0x798   :  { %v1058_v58 = vmul.f32 %v2326_v55, %v971_v31  ;;  %v1182_v31 = vld [vmem:[#allocation8 + $0x98] sm:$0xff] }
 0x799   :  { %v1069_v59 = vmul.f32 %v1610_v54, %v1059_v56  ;;  %v2260_v36 = vpack.c.bf16 %v1182_v31, %v1181_v30 }
 0x79a   :  { %v1068_v60 = vmul.f32 %v1610_v54, %v1058_v58 }
 0x79b   :  { %v1079_v61 = vadd.f32 %v1612_v57, %v1069_v59 }
 0x79c   :  { %v1078_v62 = vadd.f32 %v1612_v57, %v1068_v60 }
 0x79d   :  { %v1081_v2 = vmax.f32 %v1079_v61, 0.0 }
 0x79e   :  { %v1080_v3 = vmax.f32 %v1078_v62, 0.0  ;;  %v1628_v62 = vld [vmem:[%s2866_s7 + $0x2] ss:$0 sm:$0xff] }
 0x79f   :  { %v2788_v5 = vadd.f32 %v1081_v2, %v2733_v41 }
 0x7a0   :  { %v2791_v9 = vadd.f32 %v1080_v3, %v2736_v48  ;;  %v1091_v48 = vld [vmem:[#allocation7 + $0xb0] sm:$0xff] }
 0x7a1   :  { %v1094_v10 = vmul.f32 %v1086_v4, %v2788_v5  ;;  %v1096_v14 = vmul.f32 %v1088_v8, %v2788_v5  ;;  %v1098_v19 = vmul.f32 %v1090_v16, %v2788_v5  ;;  %v1100_v23 = vmul.f32 %v1092_v20, %v2788_v5 }
 0x7a2   :  { %v1093_v11 = vmul.f32 %v1085_v6, %v2791_v9  ;;  %v1095_v13 = vmul.f32 %v1087_v7, %v2791_v9  ;;  %v1097_v18 = vmul.f32 %v1089_v15, %v2791_v9  ;;  %v1099_v22 = vmul.f32 %v1091_v48, %v2791_v9 }
 0x7a4   :  { %v2224_v17 = vpack.c.bf16 %v1094_v10, %v1093_v11  ;;  %v2228_v41 = vpack.c.bf16 %v1096_v14, %v1095_v13  ;;  %v2232_v21 = vpack.c.bf16 %v1098_v19, %v1097_v18  ;;  %v2236_v24 = vpack.c.bf16 %v1100_v23, %v1099_v22 }
 0x7a6   :  { %2225 = vmatprep.subr.bf16.mxu0 %v2224_v17 }
 0x7a7   :  { %2227 = vmatpush3.bf16.msra.mxu0 %v2224_v17 }
 0x7a8   :  { %2229 = vmatprep.subr.bf16.mxu0 %v2228_v41 }
 0x7ab   :  { %2231 = vmatpush3.bf16.msra.mxu0 %v2228_v41 }
 0x7ac   :  { %2233 = vmatprep.subr.bf16.mxu0 %v2232_v21 }
 0x7af   :  { %2235 = vmatpush3.bf16.msra.mxu0 %v2232_v21 }
 0x7b0   :  { %2237 = vmatprep.subr.bf16.mxu0 %v2236_v24 }
 0x7b3   :  { %2239 = vmatpush3.bf16.msra.mxu0 %v2236_v24 }
 0x7b4   :  { %2273 = vmatprep.subr.bf16.mxu0 %v2685_v42 }
 0x7b6   :  { %1986 = vmatmul.mubr.msk.f32.vlgmr.msra.gmra.mrb[8].mxu0 %vm143_vm0, %v2681_v32  ;;  %v1179_v32 = vld [vmem:[#allocation8 + $0x80] sm:$0xff] }
 0x7b7   :  { %2275 = vmatpush3.bf16.msra.mxu0 %v2685_v42  ;;  %v2256_v12 = vpack.c.bf16 %v1180_v28, %v1179_v32 }
 0x7b8   :  { %2277 = vmatprep.subr.bf16.mxu0 %v2687_v44 }
 0x7b9   :  { %2257 = vmatprep.subr.bf16.mxu1 %v2256_v12 }
 0x7bb   :  { %2279 = vmatpush3.bf16.msra.mxu0 %v2687_v44 }
 0x7bc   :  { %2281 = vmatprep.subr.bf16.mxu0 %v2692_v47 }
 0x7bf   :  { %2283 = vmatpush3.bf16.msra.mxu0 %v2692_v47 }
 0x7c0   :  { %2285 = vmatprep.subr.bf16.mxu0 %v2707_v63 }
 0x7c3   :  { %2287 = vmatpush3.bf16.msra.mxu0 %v2707_v63 }
 0x7c4   :  { %2289 = vmatprep.subr.bf16.mxu0 %v2685_v42 }
 0x889   :  { %v1987_v29 = vpop.f32.mrb[8].mxu0 }
 0x88a   :  { %v1167_v33 = vpop.f32.mrb[9].mxu0  ;;  %v1177_v35 = vadd.f32 %v1987_v29, %v2667_v1  ;;  %v1620_v1 = vld [vmem:[%s2864_s5 + $0x2] ss:$0 sm:$0xff] }
 0x88b   :  { %v1176_v34 = vadd.f32 %v1167_v33, %v2665_v0  ;;  %v2268_v0 = vpack.c.bf16 %v1186_v43, %v1185_v40 }
 0x88d   :  { %2004 = vmatprep.mubr.msk.f32.mxu1 %vm143_vm0, %v1176_v34 }
 0x88e   :  { %2005 = vmatmul.mubr.msk.f32.vlgmr.msra.gmra.mrb[8].mxu1 %vm143_vm0, %v1177_v35 }
 0x88f   :  { %2259 = vmatpush3.bf16.msra.mxu1 %v2256_v12  ;;  %2023 = vmatprep.mubr.msk.f32.mxu1 %vm143_vm0, %v2791_v9 }
 0x890   :  { %2261 = vmatprep.subr.bf16.mxu1 %v2260_v36 }
 0x893   :  { %2263 = vmatpush3.bf16.msra.mxu1 %v2260_v36 }
 0x894   :  { %2265 = vmatprep.subr.bf16.mxu1 %v2264_v39 }
 0x897   :  { %2267 = vmatpush3.bf16.msra.mxu1 %v2264_v39 }
 0x898   :  { %2269 = vmatprep.subr.bf16.mxu1 %v2268_v0 }
 0x89b   :  { %2271 = vmatpush3.bf16.msra.mxu1 %v2268_v0 }
 0x89e   :  { %2024 = vmatmul.mubr.msk.f32.vlgmr.msra.gmra.mrb[8].mxu1 %vm143_vm0, %v2788_v5 }
 0x971   :  { %v2025_v45 = vpop.f32.mrb[8].mxu1 }
 0x972   :  { %v1349_v46 = vpop.f32.mrb[9].mxu1  ;;  %v1367_v50 = vadd.f32 %v2025_v45, %v1620_v1 }
 0x973   :  { %v1366_v49 = vadd.f32 %v1620_v1, %v1349_v46 }
 0x975   :  { %2042 = vmatprep.mubr.msk.f32.mxu0 %vm143_vm0, %v1366_v49 }
 0x976   :  { %2043 = vmatmul.mubr.msk.f32.vlgmr.msra.gmra.mrb[10].mxu0 %vm143_vm0, %v1367_v50 }
 0x977   :  { %2291 = vmatpush3.bf16.msra.mxu0 %v2685_v42 }
 0x978   :  { %2293 = vmatprep.subr.bf16.mxu0 %v2687_v44 }
 0x97b   :  { %2295 = vmatpush3.bf16.msra.mxu0 %v2687_v44 }
 0x97c   :  { %2297 = vmatprep.subr.bf16.mxu0 %v2692_v47 }
 0x97f   :  { %2299 = vmatpush3.bf16.msra.mxu0 %v2692_v47 }
 0x980   :  { %2301 = vmatprep.subr.bf16.mxu0 %v2707_v63 }
 0x983   :  { %2303 = vmatpush3.bf16.msra.mxu0 %v2707_v63  ;;  %v1626_v63 = vld [vmem:[%s2865_s6 + $0x2] ss:$0 sm:$0xff]  ;;  %s2463_s6 = scalar_lea.vmem %s1570_s13, 256 }
 0x984   :  { %p2464_p6 = scmp.ne.s32.totalorder %s1570_s13, %s2463_s6  ;;  %p2469_p8 = scmp.lt.s32.totalorder %s2463_s6, %s2463_s6 }
 0x986   :  { %p2470_p9 = por %p2469_p8, %p2468_p7 }
 0x988   :  { %p2471_p10 = pnand %p2470_p9, %p2464_p6 }
 0xa49   :  { %v2044_v51 = vpop.f32.mrb[10].mxu0 }
 0xa4a   :  { %v1450_v52 = vsub.f32 %v1367_v50, %v2044_v51  ;;  %v1440_v53 = vpop.f32.mrb[11].mxu0 }
 0xa4b   :  { %v1449_v54 = vsub.f32 %v1366_v49, %v1440_v53 }
 0xa4c   :  { %v1452_v56 = vmul.f32 %v1450_v52, %v1450_v52 }
 0xa4d   :  { %v1451_v55 = vmul.f32 %v1449_v54, %v1449_v54 }
 0xa4f   :  { %2061 = vmatprep.mubr.msk.f32.mxu0 %vm143_vm0, %v1451_v55 }
 0xa50   :  { %2062 = vmatmul.mubr.msk.f32.vlgmr.msra.gmra.mrb[12].mxu0 %vm143_vm0, %v1452_v56 }
 0xb23   :  { %v2063_v42 = vpop.f32.mrb[12].mxu0 }
 0xb24   :  { %v1531_v44 = vadd.f32 1e-05, %v2063_v42  ;;  %v1525_v57 = vpop.f32.mrb[13].mxu0 }
 0xb25   :  { %v1526_v58 = vadd.f32 1e-05, %v1525_v57 }
 0xb26   :  { %2327 = vrsqrt.f32 %v1531_v44 }
 0xb27   :  { %2329 = vrsqrt.f32 %v1526_v58 }
 0xb30   :  { %v2328_v47 = vpop.eup %2327 }
 0xb31   :  { %v2330_v59 = vpop.eup %2329  ;;  %v1537_v60 = vmul.f32 %v2328_v47, %v1450_v52 }
 0xb32   :  { %v1536_v61 = vmul.f32 %v2330_v59, %v1449_v54 }
 0xb33   :  { %v1547_v2 = vmul.f32 %v1626_v63, %v1537_v60 }
 0xb34   :  { %v1546_v3 = vmul.f32 %v1626_v63, %v1536_v61 }
 0xb35   :  { %v1557_v4 = vadd.f32 %v1628_v62, %v1547_v2 }
 0xb36   :  { %v1556_v6 = vadd.f32 %v1628_v62, %v1546_v3 }
 0xb37   :  { %v1559_v7 = vmax.f32 %v1557_v4, 0.0 }
 0xb38   :  { %v1558_v8 = vmax.f32 %v1556_v6, 0.0 }
 0xb39   :  { %v1561_v10 = vadd.f32 %v1559_v7, %v2788_v5 }
 0xb3a   :  { %v1560_v11 = vadd.f32 %v1558_v8, %v2791_v9 }
 0xb3b   :  { %1563 = vst.msk [vmem:[#allocation13 + $0x8] sm:$0xff] %vm143_vm0, %v1561_v10 }
 0xb3c   :  { %1562 = vst.msk [vmem:[#allocation13] sm:$0xff] %vm143_vm0, %v1560_v11 }
 0xb3d   :  { %2474 = shalt.err (!%p2471_p10)
}
 0xb3e   :  { %s2475_s10 = scalar_lea.hbm %s2868_s9, 256 }
 0xb3f   :  { %p2476_p11 = scmp.ne.s32.totalorder %s2868_s9, %s2475_s10  ;;  %p2479_p12 = scmp.lt.u32.totalorder %s2475_s10, %s2868_s9 }
 0xb41   :  { %p2481_p13 = pnand %p2479_p12, %p2476_p11 }
 0xb43   :  { %2484 = shalt.err (!%p2481_p13)
}
 0xb44   :  { %1575 = dma.vmem_to_hbm [thread:$0]  %s1570_s13, 256, %s2868_s9, [#allocation4], %s2497_s21, %s2497_s21, %s2498_s22  }
 0xb45   :  { %2493 = dma.done.wait [#allocation4], 256  }
 0xb46   :  { %2494 = vsyncadd [#allocation4], 4294967040 }
 0xb47   :  { %1579 = vsyncpa [#allocation3], 1 }
 0xb48   :  { %1580 = vsyncpa [#allocation6], 1 }
 0xb49   :  { %1581 = vsyncpa [#allocation9], 1 }
 0xb4a   :  { %1582 = vsyncpa [#allocation12], 1 }
 0xb4b   :  { %1583 = vsyncpa [#allocation4], 1 }

</bundles_post_ra>
